<compile_context>
chip_gen: v7x
topology: tpu7x:2x2x1
jax: 0.10.0
libtpu: 0.0.40
codegen_flags: <defaults>
</compile_context>

<pallas_src>
import functools

import jax
import jax.numpy as jnp
from jax.experimental import pallas as pl
from jax.experimental.pallas import tpu as pltpu

_VMEM = pl.BlockSpec(memory_space=pltpu.MemorySpace.VMEM)


# ---------------------------------------------------------------------------
# Small helpers
# ---------------------------------------------------------------------------
def _layernorm_f32(x, g, b, eps=1e-5):
    mu = jnp.mean(x, axis=-1, keepdims=True)
    var = jnp.mean((x - mu) ** 2, axis=-1, keepdims=True)
    return (x - mu) * jax.lax.rsqrt(var + eps) * g + b


def _vmem_limit_bytes():
    # Per-generation VMEM limit: capacity minus headroom for Mosaic internal scratch,
    # capped at 3/4 of physical (v7x: ~48 MiB, v5e/v6e: ~96 MiB).
    cap = 128 * 1024 * 1024
    try:
        cap = int(pltpu.get_tpu_info().vmem_capacity_bytes)
    except Exception:
        pass
    headroom = 16 * 1024 * 1024
    return int(max(32 * 1024 * 1024, min(cap - headroom, (3 * cap) // 4)))


def _pick_batch_tile(nb, max_bt=4):
    for bt in range(min(max_bt, nb), 0, -1):
        if nb % bt == 0:
            return bt
    return 1


# ---------------------------------------------------------------------------
# Pallas kernels
# ---------------------------------------------------------------------------
def before_forward_kernel(patch_ref, wp_ref, cls_ref, pos_ref, g_ref, b_ref, o_ref):
    # One grid step == one batch element. Fuses patchify matmul + class-token concat
    # + positional-embedding add + ln_pre (removes two HBM round trips of the tokens).
    patches = patch_ref[...].astype(jnp.bfloat16)                        # (N, cpp_pad) bf16
    tok = jnp.dot(patches, wp_ref[...], preferred_element_type=jnp.float32)  # (N, E) f32
    pos = pos_ref[...].astype(jnp.float32)                               # (L, E)
    cls = cls_ref[...].astype(jnp.float32)                               # (1, E)
    x = jnp.concatenate([cls, tok], axis=0) + pos                        # (L, E)
    g = g_ref[...].astype(jnp.float32)
    b = b_ref[...].astype(jnp.float32)
    o_ref[...] = _layernorm_f32(x, g, b).astype(o_ref.dtype)


def transformer_kernel(
    x_ref,
    ln1g_ref, ln1b_ref,
    wqkv_ref, bqkv_ref,
    wo_ref, bo_ref,
    ln2g_ref, ln2b_ref,
    wfc_ref, bfc_ref,
    wpr_ref, bpr_ref,
    o_ref,
    acc_ref,
    *, n_head, bt,
):
    # Grid = (batch_tiles, layers). The residual lives in acc_ref (f32 VMEM scratch)
    # across the layer axis; layer weights are indexed by the layer grid coordinate and
    # double-buffered by the Pallas pipeline (layer l+1 prefetch under layer l compute).
    layer = pl.program_id(1)

    @pl.when(layer == 0)
    def _():
        acc_ref[...] = x_ref[...].astype(jnp.float32)

    ln1g = ln1g_ref[...].astype(jnp.float32)
    ln1b = ln1b_ref[...].astype(jnp.float32)
    ln2g = ln2g_ref[...].astype(jnp.float32)
    ln2b = ln2b_ref[...].astype(jnp.float32)

    for b in range(bt):                                                  # static unroll
        x = acc_ref[b]                                                   # (L, E) f32
        L, E = x.shape
        Dh = E // n_head

        # ---- x = x + MHA(LN1(x)); 1/sqrt(Dh) pre-folded into w_qkv/b_qkv Q columns ----
        h = _layernorm_f32(x, ln1g, ln1b).astype(jnp.bfloat16)
        qkv = jnp.dot(h, wqkv_ref[...], preferred_element_type=jnp.float32) + bqkv_ref[...]

        def to_heads(z):                                                 # (L,E)->(H,L,Dh)
            return jnp.swapaxes(z.reshape(L, n_head, Dh), 0, 1).astype(jnp.bfloat16)

        q = to_heads(qkv[:, :E])
        k = to_heads(qkv[:, E:2 * E])
        v = to_heads(qkv[:, 2 * E:])

        s = jnp.einsum("hqd,hkd->hqk", q, k, preferred_element_type=jnp.float32)
        s = s - jnp.max(s, axis=-1, keepdims=True)
        p = jnp.exp(s)
        p = p * pl.reciprocal(jnp.sum(p, axis=-1, keepdims=True), approx=True)  # EUP recip
        ctx = jnp.einsum("hqk,hkd->hqd", p.astype(jnp.bfloat16), v,
                         preferred_element_type=jnp.float32)             # (H, L, Dh) f32

        # Fused head-concat + output projection: attn = sum_h ctx[h] @ w_out[h]
        # (w_out shipped as (H, Dh, E); no materialized (L, E) transpose).
        attn = jnp.dot(ctx[0].astype(jnp.bfloat16), wo_ref[0],
                       preferred_element_type=jnp.float32)
        for hh in range(1, n_head):
            attn = attn + jnp.dot(ctx[hh].astype(jnp.bfloat16), wo_ref[hh],
                                  preferred_element_type=jnp.float32)
        x = x + attn + bo_ref[...]

        # ---- x = x + MLP(LN2(x)), MLP = Linear(E,4E) -> QuickGELU -> Linear(4E,E) ----
        h2 = _layernorm_f32(x, ln2g, ln2b).astype(jnp.bfloat16)
        fc = jnp.dot(h2, wfc_ref[...], preferred_element_type=jnp.float32) + bfc_ref[...]
        fc = fc * jax.nn.sigmoid(1.702 * fc)                             # QuickGELU (f32)
        mlp = jnp.dot(fc.astype(jnp.bfloat16), wpr_ref[...],
                      preferred_element_type=jnp.float32) + bpr_ref[...]
        x = x + mlp

        acc_ref[b] = x

    @pl.when(layer == pl.num_programs(1) - 1)
    def _():
        o_ref[...] = acc_ref[...].astype(o_ref.dtype)


def head_kernel(cls_ref, g_ref, b_ref, w_ref, o_ref):
    # Fused ln_post + single stacked output projection: (3B, E) @ (E, 3D) -> (3B, 3D).
    g = g_ref[...].astype(jnp.float32)
    b = b_ref[...].astype(jnp.float32)
    h = _layernorm_f32(cls_ref[...].astype(jnp.float32), g, b).astype(jnp.bfloat16)
    o_ref[...] = jnp.dot(h, w_ref[...],
                         preferred_element_type=jnp.float32).astype(o_ref.dtype)


# ---------------------------------------------------------------------------
# Pallas wrappers
# ---------------------------------------------------------------------------
def before_forward(imgs, p, *, patch_size, width):
    # imgs: (NB, 3, H, W). Conv2d(stride=patch, kernel=patch, no bias) == patchify+matmul.
    NB, C, H, W = imgs.shape
    ps = patch_size
    gh, gw = H // ps, W // ps
    N = gh * gw
    L = N + 1
    cpp = C * ps * ps
    cpp_pad = p["w_patch"].shape[0]                     # already lane-padded offline
    patches = (
        imgs.reshape(NB, C, gh, ps, gw, ps)
        .transpose(0, 2, 4, 1, 3, 5)                    # (NB, gh, gw, C, p, p)
        .reshape(NB, N, cpp)
    )
    if cpp_pad != cpp:
        patches = jnp.pad(patches, ((0, 0), (0, 0), (0, cpp_pad - cpp)))
    patches = patches.astype(jnp.bfloat16)              # halve patch DMA bytes

    return pl.pallas_call(
        before_forward_kernel,
        out_shape=jax.ShapeDtypeStruct((NB, L, width), jnp.float32),
        grid=(NB,),
        in_specs=[
            pl.BlockSpec((None, N, cpp_pad), lambda i: (i, 0, 0)),   # patches (bf16)
            pl.BlockSpec((cpp_pad, width), lambda i: (0, 0)),        # patch weight (bf16)
            pl.BlockSpec((1, width), lambda i: (0, 0)),              # class embedding
            pl.BlockSpec((L, width), lambda i: (0, 0)),              # positional embedding
            pl.BlockSpec((1, width), lambda i: (0, 0)),              # ln_pre gamma
            pl.BlockSpec((1, width), lambda i: (0, 0)),              # ln_pre beta
        ],
        out_specs=pl.BlockSpec((None, L, width), lambda i: (i, 0, 0)),
        compiler_params=pltpu.CompilerParams(dimension_semantics=("parallel",)),
    )(patches, p["w_patch"], p["class_embedding"], p["positional_embedding"],
      p["ln_pre_g"], p["ln_pre_b"])


def transformer_stack(x, tb, *, n_head, layers):
    """Run all residual attention blocks in one pallas_call. x: (NB, L, E) f32."""
    NB, L, E = x.shape
    H = n_head
    Dh = E // n_head
    bt = _pick_batch_tile(NB)
    nt = NB // bt
    kern = functools.partial(transformer_kernel, n_head=n_head, bt=bt)

    def wspec(shape):
        nd = len(shape)
        return pl.BlockSpec((None,) + shape, lambda i, l, _nd=nd: (l,) + (0,) * _nd)

    return pl.pallas_call(
        kern,
        out_shape=jax.ShapeDtypeStruct(x.shape, x.dtype),
        grid=(nt, layers),
        in_specs=[
            pl.BlockSpec((bt, L, E), lambda i, l: (i, 0, 0)),        # x (resident over l)
            wspec((1, E)), wspec((1, E)),                            # ln1 gamma/beta (f32)
            wspec((E, 3 * E)), wspec((1, 3 * E)),                    # in_proj W(bf16)/b(f32)
            wspec((H, Dh, E)), wspec((1, E)),                        # out_proj W(bf16)/b(f32)
            wspec((1, E)), wspec((1, E)),                            # ln2 gamma/beta (f32)
            wspec((E, 4 * E)), wspec((1, 4 * E)),                    # c_fc W(bf16)/b(f32)
            wspec((4 * E, E)), wspec((1, E)),                        # c_proj W(bf16)/b(f32)
        ],
        out_specs=pl.BlockSpec((bt, L, E), lambda i, l: (i, 0, 0)),  # constant over l
        scratch_shapes=[pltpu.VMEM((bt, L, E), jnp.float32)],        # resident residual
        compiler_params=pltpu.CompilerParams(
            dimension_semantics=("parallel", "arbitrary"),           # megacore over batch
            vmem_limit_bytes=_vmem_limit_bytes(),                    # per-chip derived
        ),
    )(
        x,
        tb["ln1_g"], tb["ln1_b"],
        tb["w_qkv"], tb["b_qkv"],
        tb["w_out"], tb["b_out"],
        tb["ln2_g"], tb["ln2_b"],
        tb["w_fc"], tb["b_fc"],
        tb["w_proj"], tb["b_proj"],
    )


def head_projection(cls_all, p):
    # cls_all: (3B, E) f32; w_head: (E, 3D) bf16 (proj | attr_proj | obj_proj).
    NB, E = cls_all.shape
    D3 = p["w_head"].shape[1]
    return pl.pallas_call(
        head_kernel,
        out_shape=jax.ShapeDtypeStruct((NB, D3), jnp.float32),
        in_specs=[_VMEM] * 4,
        out_specs=_VMEM,
    )(cls_all, p["ln_post_g"], p["ln_post_b"], p["w_head"])


# ---------------------------------------------------------------------------
# Parameters
# ---------------------------------------------------------------------------
def init_params(key, *, patch_size, width, layers, output_dim, n_tokens):
    scale = width ** -0.5
    ks = jax.random.split(key, 7 + layers)

    def nrm(k, shape, s=0.02):
        return (jax.random.normal(k, shape, jnp.float32) * s).astype(jnp.float32)

    params = {
        "w_conv": nrm(ks[0], (width, 3, patch_size, patch_size)),
        "class_embedding": scale * jax.random.normal(ks[1], (1, width), jnp.float32),
        "positional_embedding": scale * jax.random.normal(ks[2], (n_tokens, width), jnp.float32),
        "ln_pre_g": jnp.ones((1, width), jnp.float32),
        "ln_pre_b": jnp.zeros((1, width), jnp.float32),
        "ln_post_g": jnp.ones((1, width), jnp.float32),
        "ln_post_b": jnp.zeros((1, width), jnp.float32),
        "proj": scale * jax.random.normal(ks[3], (width, output_dim), jnp.float32),
        "attr_proj": scale * jax.random.normal(ks[4], (width, output_dim), jnp.float32),
        "obj_proj": scale * jax.random.normal(ks[5], (width, output_dim), jnp.float32),
        "blocks": [],
    }
    for l in range(layers):
        kb = jax.random.split(ks[7 + l], 8)
        params["blocks"].append({
            "ln1_g": jnp.ones((1, width), jnp.float32),
            "ln1_b": jnp.zeros((1, width), jnp.float32),
            "w_qkv": nrm(kb[0], (width, 3 * width)),
            "b_qkv": nrm(kb[1], (1, 3 * width)),
            "w_out": nrm(kb[2], (width, width)),
            "b_out": nrm(kb[3], (1, width)),
            "ln2_g": jnp.ones((1, width), jnp.float32),
            "ln2_b": jnp.zeros((1, width), jnp.float32),
            "w_fc": nrm(kb[4], (width, 4 * width)),
            "b_fc": nrm(kb[5], (1, 4 * width)),
            "w_proj": nrm(kb[6], (4 * width, width)),
            "b_proj": nrm(kb[7], (1, width)),
        })
    return params


def prepare_params(params, *, n_head, width):
    """One-time offline prep: fold 1/sqrt(Dh) into Q columns, cast matmul weights to
    bf16, lane-pad the patchify weight, reshape out_proj head-major, stack per-layer
    weights along a leading layer axis, concat the head projections."""
    Dh = width // n_head
    scale = Dh ** -0.5
    q_scale = jnp.concatenate(
        [jnp.full((width,), scale, jnp.float32), jnp.ones((2 * width,), jnp.float32)]
    )

    w_conv = params["w_conv"]                                   # (E, 3, p, p)
    cpp = int(w_conv.shape[1] * w_conv.shape[2] * w_conv.shape[3])
    cpp_pad = ((cpp + 127) // 128) * 128
    w_patch = w_conv.reshape(width, cpp).T                      # (cpp, E)
    if cpp_pad != cpp:
        w_patch = jnp.pad(w_patch, ((0, cpp_pad - cpp), (0, 0)))

    prep = {
        "w_patch": w_patch.astype(jnp.bfloat16),                # (cpp_pad, E)
        "class_embedding": params["class_embedding"],
        "positional_embedding": params["positional_embedding"],
        "ln_pre_g": params["ln_pre_g"], "ln_pre_b": params["ln_pre_b"],
        "ln_post_g": params["ln_post_g"], "ln_post_b": params["ln_post_b"],
        "w_head": jnp.concatenate(
            [params["proj"], params["attr_proj"], params["obj_proj"]], axis=1
        ).astype(jnp.bfloat16),                                 # (E, 3D)
    }

    def stack(fn):
        return jnp.stack([fn(blk) for blk in params["blocks"]], axis=0)

    prep["tblock"] = {
        "ln1_g": stack(lambda b: b["ln1_g"]),
        "ln1_b": stack(lambda b: b["ln1_b"]),
        "w_qkv": stack(lambda b: (b["w_qkv"] * q_scale[None, :]).astype(jnp.bfloat16)),
        "b_qkv": stack(lambda b: b["b_qkv"] * q_scale[None, :]),
        "w_out": stack(lambda b: b["w_out"].reshape(n_head, Dh, width).astype(jnp.bfloat16)),
        "b_out": stack(lambda b: b["b_out"]),
        "ln2_g": stack(lambda b: b["ln2_g"]),
        "ln2_b": stack(lambda b: b["ln2_b"]),
        "w_fc": stack(lambda b: b["w_fc"].astype(jnp.bfloat16)),
        "b_fc": stack(lambda b: b["b_fc"]),
        "w_proj": stack(lambda b: b["w_proj"].astype(jnp.bfloat16)),
        "b_proj": stack(lambda b: b["b_proj"]),
    }
    return prep


# ---------------------------------------------------------------------------
# VisionTransformer forward (glue in plain JAX, hot paths in Pallas)
# ---------------------------------------------------------------------------
def vision_transformer_forward(x_tuple, prep, *, patch_size, width, layers, heads):
    x_self_img, x_same_attr_img, x_same_obj_img = x_tuple
    B = x_self_img.shape[0]

    # Stream dedup: x_self / x_attr / x_obj are identical clones through every resblock
    # (no fusion path when has_v_adapter=False), so only 3 distinct streams run.
    imgs = jnp.concatenate([x_self_img, x_same_attr_img, x_same_obj_img], axis=0)  # (3B,...)
    x = before_forward(imgs, prep, patch_size=patch_size, width=width)             # (3B,L,E)
    x = transformer_stack(x, prep["tblock"], n_head=heads, layers=layers)          # (3B,L,E)

    cls_all = x[:, 0, :]                                        # (3B, E): [self; sattr; sobj]
    y = head_projection(cls_all, prep)                          # (3B, 3D) f32
    D = prep["w_head"].shape[1] // 3

    x_self = y[0:B, 0:D]                                        # ln_post(cls_self) @ proj
    x_attr = y[0:B, D:2 * D]                                    # cls_attr == cls_self
    x_obj = y[0:B, 2 * D:3 * D]                                 # cls_obj  == cls_self
    x_same_attr = y[B:2 * B, D:2 * D]
    x_same_obj = y[2 * B:3 * B, 2 * D:3 * D]
    return [x_self, x_attr, x_obj, x_same_attr, x_same_obj]


# ---------------------------------------------------------------------------
if __name__ == "__main__":
    # Small synthetic config
    input_resolution = 16
    patch_size = 8
    width = 64
    layers = 2
    heads = 2
    output_dim = 32
    batch = 2
    n_tokens = (input_resolution // patch_size) ** 2 + 1        # 5

    key = jax.random.PRNGKey(0)
    k_par, k_a, k_b, k_c = jax.random.split(key, 4)
    params = init_params(
        k_par, patch_size=patch_size, width=width, layers=layers,
        output_dim=output_dim, n_tokens=n_tokens,
    )
    prep = prepare_params(params, n_head=heads, width=width)

    img_shape = (batch, 3, input_resolution, input_resolution)
    x_self = jax.random.normal(k_a, img_shape, jnp.float32)
    x_same_attr = jax.random.normal(k_b, img_shape, jnp.float32)
    x_same_obj = jax.random.normal(k_c, img_shape, jnp.float32)

    outs = vision_transformer_forward(
        (x_self, x_same_attr, x_same_obj), prep,
        patch_size=patch_size, width=width, layers=layers, heads=heads,
    )
    outs = [jax.block_until_ready(o) for o in outs]
    assert all(o.shape == (batch, output_dim) for o in outs)
    assert all(bool(jnp.all(jnp.isfinite(o))) for o in outs)
    print("KERNEL_OK")
</pallas_src>

<mosaic_0001>
module attributes {stable_mosaic.version = 11 : i64} {
  func.func @before_forward_kernel(%arg0: i32, %arg1: memref<1x4x256xbf16, #tpu.memory_space<vmem>>, %arg2: memref<256x64xbf16, #tpu.memory_space<vmem>>, %arg3: memref<1x64xf32, #tpu.memory_space<vmem>>, %arg4: memref<5x64xf32, #tpu.memory_space<vmem>>, %arg5: memref<1x64xf32, #tpu.memory_space<vmem>>, %arg6: memref<1x64xf32, #tpu.memory_space<vmem>>, %arg7: memref<1x5x64xf32, #tpu.memory_space<vmem>>) attributes {dimension_semantics = [#tpu.dimension_semantics<parallel>], iteration_bounds = array<i64: 6>, scalar_prefetch = 0 : i64, scratch_operands = 0 : i64, tpu.core_type = #tpu.core_type<tc>, window_params = [{transform_indices = @transform_0, window_bounds = array<i64: 1, 4, 256>}, {pipeline_mode = #tpu.pipeline_mode<synchronous>, transform_indices = @transform_1, window_bounds = array<i64: 256, 64>}, {pipeline_mode = #tpu.pipeline_mode<synchronous>, transform_indices = @transform_2, window_bounds = array<i64: 1, 64>}, {pipeline_mode = #tpu.pipeline_mode<synchronous>, transform_indices = @transform_3, window_bounds = array<i64: 5, 64>}, {pipeline_mode = #tpu.pipeline_mode<synchronous>, transform_indices = @transform_4, window_bounds = array<i64: 1, 64>}, {pipeline_mode = #tpu.pipeline_mode<synchronous>, transform_indices = @transform_5, window_bounds = array<i64: 1, 64>}, {transform_indices = @transform_6, window_bounds = array<i64: 1, 5, 64>}]} {
    %c0 = arith.constant 0 : index
    %c0_0 = arith.constant 0 : index
    %c0_1 = arith.constant 0 : index
    %0 = vector.load %arg1[%c0, %c0_0, %c0_1] : memref<1x4x256xbf16, #tpu.memory_space<vmem>>, vector<1x4x256xbf16>
    %1 = vector.shape_cast %0 : vector<1x4x256xbf16> to vector<4x256xbf16>
    %c0_2 = arith.constant 0 : index
    %c0_3 = arith.constant 0 : index
    %2 = vector.load %arg2[%c0_2, %c0_3] : memref<256x64xbf16, #tpu.memory_space<vmem>>, vector<256x64xbf16>
    %cst = arith.constant dense<0.000000e+00> : vector<4x64xf32>
    %3 = tpu.matmul %1, %2, %cst {dimension_numbers = #tpu.dot_dimension_numbers<[1], [0], [0], [1], [0, 0, 1, 1], [], []>} : vector<4x256xbf16>, vector<256x64xbf16>, vector<4x64xf32> -> vector<4x64xf32>
    %c0_4 = arith.constant 0 : index
    %c0_5 = arith.constant 0 : index
    %4 = vector.load %arg4[%c0_4, %c0_5] : memref<5x64xf32, #tpu.memory_space<vmem>>, vector<5x64xf32>
    %c0_6 = arith.constant 0 : index
    %c0_7 = arith.constant 0 : index
    %5 = vector.load %arg3[%c0_6, %c0_7] : memref<1x64xf32, #tpu.memory_space<vmem>>, vector<1x64xf32>
    %6 = tpu.concatenate %5, %3 in 0 : vector<1x64xf32>, vector<4x64xf32> -> vector<5x64xf32>
    %7 = arith.addf %6, %4 : vector<5x64xf32>
    %c0_8 = arith.constant 0 : index
    %c0_9 = arith.constant 0 : index
    %8 = vector.load %arg5[%c0_8, %c0_9] : memref<1x64xf32, #tpu.memory_space<vmem>>, vector<1x64xf32>
    %c0_10 = arith.constant 0 : index
    %c0_11 = arith.constant 0 : index
    %9 = vector.load %arg6[%c0_10, %c0_11] : memref<1x64xf32, #tpu.memory_space<vmem>>, vector<1x64xf32>
    %cst_12 = arith.constant dense<0.000000e+00> : vector<5xf32>
    %10 = vector.multi_reduction <add>, %7, %cst_12 [1] : vector<5x64xf32> to vector<5xf32>
    %11 = vector.shape_cast %10 : vector<5xf32> to vector<5x1xf32>
    %cst_13 = arith.constant 6.400000e+01 : f32
    %12 = vector.broadcast %cst_13 : f32 to vector<5x1xf32>
    %13 = arith.divf %11, %12 : vector<5x1xf32>
    %14 = vector.broadcast %13 : vector<5x1xf32> to vector<5x64xf32>
    %15 = arith.subf %7, %14 : vector<5x64xf32>
    %16 = arith.mulf %15, %15 : vector<5x64xf32>
    %cst_14 = arith.constant dense<0.000000e+00> : vector<5xf32>
    %17 = vector.multi_reduction <add>, %16, %cst_14 [1] : vector<5x64xf32> to vector<5xf32>
    %18 = vector.shape_cast %17 : vector<5xf32> to vector<5x1xf32>
    %cst_15 = arith.constant 6.400000e+01 : f32
    %19 = vector.broadcast %cst_15 : f32 to vector<5x1xf32>
    %20 = arith.divf %18, %19 : vector<5x1xf32>
    %21 = vector.broadcast %13 : vector<5x1xf32> to vector<5x64xf32>
    %22 = arith.subf %7, %21 : vector<5x64xf32>
    %cst_16 = arith.constant 9.99999974E-6 : f32
    %23 = vector.broadcast %cst_16 : f32 to vector<5x1xf32>
    %24 = arith.addf %20, %23 : vector<5x1xf32>
    %25 = math.rsqrt %24 : vector<5x1xf32>
    %26 = vector.broadcast %25 : vector<5x1xf32> to vector<5x64xf32>
    %27 = arith.mulf %22, %26 : vector<5x64xf32>
    %28 = vector.broadcast %8 : vector<1x64xf32> to vector<5x64xf32>
    %29 = arith.mulf %27, %28 : vector<5x64xf32>
    %30 = vector.broadcast %9 : vector<1x64xf32> to vector<5x64xf32>
    %31 = arith.addf %29, %30 : vector<5x64xf32>
    %c0_17 = arith.constant 0 : index
    %c0_18 = arith.constant 0 : index
    %c0_19 = arith.constant 0 : index
    %32 = vector.load %arg7[%c0_17, %c0_18, %c0_19] : memref<1x5x64xf32, #tpu.memory_space<vmem>>, vector<1x5x64xf32>
    %33 = vector.shape_cast %32 : vector<1x5x64xf32> to vector<5x64xf32>
    %34 = vector.shape_cast %31 : vector<5x64xf32> to vector<1x5x64xf32>
    tpu.vector_store %arg7[%c0_17, %c0_18, %c0_19], %34 {strides = array<i32>} : memref<1x5x64xf32, #tpu.memory_space<vmem>>, vector<1x5x64xf32>,
    return
  }
  func.func @transform_0(%arg0: i32) -> (i32, i32, i32) {
    %c0_i32 = arith.constant 0 : i32
    %c0_i32_0 = arith.constant 0 : i32
    %c0_i32_1 = arith.constant 0 : i32
    return %arg0, %c0_i32, %c0_i32_0 : i32, i32, i32
  }
  func.func @transform_1(%arg0: i32) -> (i32, i32) {
    %c0_i32 = arith.constant 0 : i32
    %c0_i32_0 = arith.constant 0 : i32
    %c0_i32_1 = arith.constant 0 : i32
    return %c0_i32, %c0_i32_0 : i32, i32
  }
  func.func @transform_2(%arg0: i32) -> (i32, i32) {
    %c0_i32 = arith.constant 0 : i32
    %c0_i32_0 = arith.constant 0 : i32
    %c0_i32_1 = arith.constant 0 : i32
    return %c0_i32, %c0_i32_0 : i32, i32
  }
  func.func @transform_3(%arg0: i32) -> (i32, i32) {
    %c0_i32 = arith.constant 0 : i32
    %c0_i32_0 = arith.constant 0 : i32
    %c0_i32_1 = arith.constant 0 : i32
    return %c0_i32, %c0_i32_0 : i32, i32
  }
  func.func @transform_4(%arg0: i32) -> (i32, i32) {
    %c0_i32 = arith.constant 0 : i32
    %c0_i32_0 = arith.constant 0 : i32
    %c0_i32_1 = arith.constant 0 : i32
    return %c0_i32, %c0_i32_0 : i32, i32
  }
  func.func @transform_5(%arg0: i32) -> (i32, i32) {
    %c0_i32 = arith.constant 0 : i32
    %c0_i32_0 = arith.constant 0 : i32
    %c0_i32_1 = arith.constant 0 : i32
    return %c0_i32, %c0_i32_0 : i32, i32
  }
  func.func @transform_6(%arg0: i32) -> (i32, i32, i32) {
    %c0_i32 = arith.constant 0 : i32
    %c0_i32_0 = arith.constant 0 : i32
    %c0_i32_1 = arith.constant 0 : i32
    return %arg0, %c0_i32, %c0_i32_0 : i32, i32, i32
  }
}

</mosaic_0001>

<bundles_post_ra>
// kernel: tpu_custom_call.1
= control target key start
LH: loop header
LB: loop body
LE: loop exit
PB: predicated region body
PF: predicated region fallthrough
CT: control target
= control target key end

     0   :  { %s645_s21 = smov 0   ;;  %s729_s0 = inlined_call_operand.vmem [shape: bf16[6,4,256], index: 0, kind: input, shape index: {}]   ;;  %s730_s1 = inlined_call_operand.vmem [shape: bf16[256,64], index: 1, kind: input, shape index: {}]   ;;  %s731_s2 = inlined_call_operand.vmem [shape: f32[1,64], index: 2, kind: input, shape index: {}]   ;;  %s732_s3 = inlined_call_operand.vmem [shape: f32[5,64], index: 3, kind: input, shape index: {}]   ;;  %s733_s4 = inlined_call_operand.vmem [shape: f32[1,64], index: 4, kind: input, shape index: {}]   ;;  %s734_s5 = inlined_call_operand.vmem [shape: f32[1,64], index: 5, kind: input, shape index: {}]   ;;  %s735_s6 = inlined_call_operand.vmem [shape: f32[6,5,64], index: 6, kind: output, shape index: {}]  }
   0x1 LB: > { %s524_s22 = sadd.s32 4294967295, %s608_s21   ;;  %p528_p0 = scmp.ge.s32.totalorder %s608_s21, 1  ;;  %s608_s21 = sphi %s645_s21, %s16_s21  }
   0x2   : > { %p212_p1 = scmp.lt.s32.totalorder %s608_s21, 7 }
   0x4   : > { %p213_p2 = pnand %p528_p0, %p212_p1 }
   0x5   : > { %v584_v0 = vld [vmem:[%s730_s1 + $0x40] sm:$0xff] (!%p213_p2)   ;;  %v586_v2 = vld [vmem:[%s730_s1 + $0x48] sm:$0xff] (!%p213_p2)   ;;  %p241_p3 = scmp.lt.s32.totalorder (!%p213_p2), %s524_s22, 5  ;;  %v588_v4 = vld [vmem:[%s730_s1 + $0x50] sm:$0xff] (!%p213_p2)   ;;  %vm436_vm0 = vcmask (!%p213_p2), 1040384   ;;  %vm441_vm1 = vcmask (!%p213_p2), 520192  }
   0x6   : > { %216 = sbr.rel (%p213_p2) target bundleno = 572 (0x23c), region = 44  ;;  %v585_v1 = vld [vmem:[%s730_s1] sm:$0xff] (!%p213_p2)   ;;  %554 = vmatprep.subr.bf16.mxu0 (!%p213_p2), %v584_v0  ;;  %v587_v3 = vld [vmem:[%s730_s1 + $0x8] sm:$0xff] (!%p213_p2)   ;;  %v589_v5 = vld [vmem:[%s730_s1 + $0x10] sm:$0xff] (!%p213_p2)  }
   0x7   : > { %555 = vmatpush3.bf16.msra.mxu0 (!%p213_p2), %v585_v1  ;;  %v590_v6 = vld [vmem:[%s730_s1 + $0x58] sm:$0xff] (!%p213_p2)   ;;  %v592_v8 = vld [vmem:[%s730_s1 + $0x60] sm:$0xff] (!%p213_p2)   ;;  %v594_v10 = vld [vmem:[%s730_s1 + $0x68] sm:$0xff] (!%p213_p2)  }
   0x8   : > { %556 = vmatprep.subr.bf16.mxu0 (!%p213_p2), %v586_v2  ;;  %v591_v7 = vld [vmem:[%s730_s1 + $0x18] sm:$0xff] (!%p213_p2)   ;;  %v593_v9 = vld [vmem:[%s730_s1 + $0x20] sm:$0xff] (!%p213_p2)   ;;  %v595_v13 = vld [vmem:[%s730_s1 + $0x28] sm:$0xff] (!%p213_p2)  }
   0x9   : > { %v596_v14 = vld [vmem:[%s730_s1 + $0x70] sm:$0xff] (!%p213_p2)   ;;  %v598_v16 = vld [vmem:[%s730_s1 + $0x78] sm:$0xff] (!%p213_p2)   ;;  %v432_v23 = vld [vmem:[%s731_s2] sm:$0x1] (!%p213_p2) }
   0xa   : > { %v597_v15 = vld [vmem:[%s730_s1 + $0x30] sm:$0xff] (!%p213_p2)   ;;  %v599_v17 = vld [vmem:[%s730_s1 + $0x38] sm:$0xff] (!%p213_p2)   ;;  %v431_v25 = vld [vmem:[%s732_s3] sm:$0x1f] (!%p213_p2) }
   0xb   : > { %557 = vmatpush3.bf16.msra.mxu0 (!%p213_p2), %v587_v3  ;;  %v549_v38 = vld [vmem:[%s733_s4] ss:$0 sm:$0xff] (!%p213_p2) }
   0xc   : > { %558 = vmatprep.subr.bf16.mxu0 (!%p213_p2), %v588_v4  ;;  %v550_v40 = vld [vmem:[%s734_s5] ss:$0 sm:$0xff] (!%p213_p2) }
   0xd   : > { %s737_s22 = smov (!%p241_p3, %s524_s22), 5 }
   0xe   : > { %s553_s13 = sshll.u32 %s737_s22, 2  ;;  %s531_s19 = sshll.u32 %s737_s22, 3 }
   0xf   : > { %559 = vmatpush3.bf16.msra.mxu0 %v589_v5  ;;  %s245_s20 = scalar_lea.vmem %s729_s0, %s553_s13  ;;  %s249_s26 = scalar_lea.vmem %s735_s6, %s531_s19 }
  0x10   : > { %560 = vmatprep.subr.bf16.mxu0 %v590_v6  ;;  %v532_v11 = vld.sshfl [vmem:[%s245_s20] sm:$0x33 pattern:$0x76325410] }
  0x11   : > { %v292_v12 = vcombine.high %v532_v11, %v532_v11 }
  0x13   : > { %561 = vmatpush3.bf16.msra.mxu0 %v591_v7  ;;  %423 = vmatprep.mubr.bf16.mxu0 %v292_v12 }
  0x14   : > { %562 = vmatprep.subr.bf16.mxu0 %v592_v8 }
  0x17   : > { %563 = vmatpush3.bf16.msra.mxu0 %v593_v9 }
  0x18   : > { %564 = vmatprep.subr.bf16.mxu0 %v594_v10 }
  0x1b   : > { %565 = vmatpush3.bf16.msra.mxu0 %v595_v13 }
  0x1c   : > { %566 = vmatprep.subr.bf16.mxu0 %v596_v14 }
  0x1f   : > { %567 = vmatpush3.bf16.msra.mxu0 %v597_v15 }
  0x20   : > { %568 = vmatprep.subr.bf16.mxu0 %v598_v16 }
  0x23   : > { %569 = vmatpush3.bf16.msra.mxu0 %v599_v17 }
  0x26   : > { %424 = vmatmul.mubr.bf16.vlgmr.msra.gmra.mrb[0].mxu0 %v532_v11 }
  0xf9   : > { %v570_v18 = vpop.f32.mrb[0].mxu0 }
  0xfa   : > { %v571_v19 = vpop.f32.mrb[1].mxu0 }
  0xfb   : > { %v572_v20 = vadd.f32 %v571_v19, %v570_v18  ;;  %v573_v21 = vpop.f32.mrb[2].mxu0 }
  0xfc   : > { %v574_v22 = vpop.f32.mrb[3].mxu0 }
  0xfd   : > { %v434_v24 = vrot.slane %v572_v20, 7 }
  0xff   : > { %v437_v26 = vsel %vm436_vm0, %v432_v23, %v434_v24 }
 0x100   : > { %v438_v27 = vadd.f32 %v437_v26, %v431_v25 }
 0x102   : > { %v442_v28 = vsel %vm441_vm1, %v438_v27, 0.0 }
 0x103   : > { %443 = vadd.xlane.f32.xlu0 %v442_v28 }
 0x190   : > { %v444_v29 = vpop.xlane.xlu0 %443 }
 0x191   : > { %v446_v30 = vmul.f32 0.015625, %v444_v29 }
 0x193   : > { %v447_v31 = vsub.f32 %v438_v27, %v446_v30 }
 0x195   : > { %v448_v32 = vmul.f32 %v447_v31, %v447_v31 }
 0x197   : > { %v449_v33 = vsel %vm441_vm1, %v448_v32, 0.0 }
 0x198   : > { %450 = vadd.xlane.f32.xlu0 %v449_v33 }
 0x225   : > { %v451_v34 = vpop.xlane.xlu0 %450 }
 0x226   : > { %v452_v35 = vmul.f32 0.015625, %v451_v34 }
 0x228   : > { %v453_v36 = vadd.f32 1e-05, %v452_v35 }
 0x22a   : > { %600 = vrsqrt.f32 %v453_v36 }
 0x234   : > { %v601_v37 = vpop.eup %600 }
 0x235   : > { %v455_v39 = vmul.f32 %v601_v37, %v447_v31 }
 0x237   : > { %v462_v41 = vmul.f32 %v549_v38, %v455_v39 }
 0x239   : > { %v469_v42 = vadd.f32 %v550_v40, %v462_v41 }
 0x23b   : > { %470 = vst.msk [vmem:[%s249_s26] sm:$0x1f] %vm441_vm1, %v469_v42 }
 0x23c PF: > { %s16_s21 = sadd.s32 1, %s608_s21  }
 0x23d   : > { %p13_p4 = scmp.ge.s32.totalorder %s16_s21, 8  }
 0x23f   :  { %15 = sbr.rel (!%p13_p4) target bundleno = 1 (0x1), region = 74 }

</bundles_post_ra>
